<compile_context>
chip_gen: v7x
topology: tpu7x:2x2x1
jax: 0.10.0
libtpu: 0.0.40
codegen_flags: <defaults>
</compile_context>

<pallas_src>
import functools

import jax
import jax.numpy as jnp
from jax.experimental import pallas as pl
from jax.experimental.pallas import tpu as pltpu

LANE = 128
SUBLANE = 8


def _round_up(n, m):
    return ((n + m - 1) // m) * m


# ------------------------- Pallas kernel -------------------------

def _basic_decoder_kernel(
    x_ref,               # (H, TM)   bf16 ; sublane rows >= IN are zero
    w0_ref, b0_ref,      # (H, H)    bf16 (cols >= IN zero), (H, 1) f32
    w1_ref, b1_ref,      # (H, H)    bf16,                   (H, 1) f32
    w2_ref, b2_ref,      # (H, H)    bf16 (rows < IN zero),  (H, 1) f32 (rows < IN zero)
    w3_ref, b3_ref,      # (H, H)    bf16,                   (H, 1) f32
    wo_ref, bo_ref,      # (OUT8, H) bf16,                   (OUT8, 1) f32
    o_ref,               # (OUT8, TM) f32  -- lane-dense store
    *, matmul_dtype,
):
    relu = lambda v: jnp.maximum(v, 0.0)          # args.periodic == False -> ReLU
    # Feature-major matmul: (fan_out, fan_in) @ (fan_in, TM) -> (fan_out, TM).
    # bf16 MXU operands, f32 accumulation.  Bias is a (fan_out, 1) f32 column
    # broadcast along lanes.
    mm = lambda w, a: jnp.dot(w, a.astype(matmul_dtype),
                              preferred_element_type=jnp.float32)

    x = x_ref[...]                                             # bf16, padded rows = 0

    h = relu(mm(w0_ref[...], x) + b0_ref[...])                 # layer 0
    h = relu(mm(w1_ref[...], h) + b1_ref[...])                 # layer 1
    h2 = relu(mm(w2_ref[...], h) + b2_ref[...])                # layer 2; rows < IN == 0
    # skip: concat([x, h2], -1)  ==  h2 + x  (disjoint, zero-padded sublane support)
    h = relu(mm(w3_ref[...], h2 + x.astype(jnp.float32)) + b3_ref[...])   # layer 3
    o_ref[...] = (mm(wo_ref[...], h) + bo_ref[...]).astype(o_ref.dtype)   # lout


# ------------------------- wrapper -------------------------

@functools.partial(jax.jit, static_argnames=("tm", "matmul_dtype"))
def basic_decoder(x, params, *, tm=None, matmul_dtype=jnp.bfloat16):
    (w0, b0, w1, b1, w2, b2, w3, b3, wo, bo) = params
    N, in_dim = x.shape
    hidden = w0.shape[1]
    out_dim = wo.shape[1]
    assert w2.shape[1] == hidden - in_dim and hidden > in_dim

    # Batch is the lane (last) dim now, so tiles are multiples of 128 lanes.
    # Aim for >= 4 tiles (even split across v7x's two TensorCores) but cap the
    # tile at 2048 lanes; per-step VMEM is < 0.5 MB at tm=2048 on any gen.
    if tm is None:
        n128 = _round_up(max(N, 1), LANE)
        tm = max(LANE, min(2048, _round_up(-(-n128 // 4), LANE)))
    tm = _round_up(tm, LANE)
    n_pad = _round_up(N, tm)                   # cdiv grid via zero lane padding
    out_rows = _round_up(out_dim, SUBLANE)     # sublane-pad only (8x, not 128x)

    f32 = jnp.float32
    md = matmul_dtype

    # ---- one-time XLA glue: transpose / pad / pre-cast operands ----
    # x: (N, in_dim) f32 -> feature-major (hidden, n_pad) bf16, rows >= in_dim zero.
    x_t = jnp.zeros((hidden, n_pad), md).at[:in_dim, :N].set(x.T.astype(md))
    # Layer 0: pad the contraction (columns) so the single padded x tile works.
    w0_t = jnp.zeros((hidden, hidden), f32).at[:, :in_dim].set(w0.T)
    b0_t = b0.T
    w1_t, b1_t = w1.T, b1.T
    # Layer 2: zero rows < in_dim so the skip add is exact concat (see header).
    w2_t = jnp.zeros((hidden, hidden), f32).at[in_dim:, :].set(w2.T)
    b2_t = jnp.zeros((hidden, 1), f32).at[in_dim:, :].set(b2.T)
    w3_t, b3_t = w3.T, b3.T
    # Output layer: pad fan_out to 8 sublanes (lane-dense (out_rows, tm) store).
    wo_t = jnp.zeros((out_rows, hidden), f32).at[:out_dim, :].set(wo.T)
    bo_t = jnp.zeros((out_rows, 1), f32).at[:out_dim, :].set(bo.T)

    weights = [w0_t.astype(md), b0_t.astype(f32),
               w1_t.astype(md), b1_t.astype(f32),
               w2_t.astype(md), b2_t.astype(f32),
               w3_t.astype(md), b3_t.astype(f32),
               wo_t.astype(md), bo_t.astype(f32)]

    def resident(arr):   # whole-array block, constant index_map -> fetched once
        return pl.BlockSpec(arr.shape, lambda i: (0,) * arr.ndim)

    grid = (n_pad // tm,)
    out_t = pl.pallas_call(
        functools.partial(_basic_decoder_kernel, matmul_dtype=md),
        out_shape=jax.ShapeDtypeStruct((out_rows, n_pad), f32),
        grid_spec=pltpu.PrefetchScalarGridSpec(
            num_scalar_prefetch=0,
            grid=grid,
            in_specs=[pl.BlockSpec((hidden, tm), lambda i: (0, i))]
                     + [resident(w) for w in weights],
            out_specs=pl.BlockSpec((out_rows, tm), lambda i: (0, i)),
        ),
        compiler_params=pltpu.CompilerParams(
            dimension_semantics=("parallel",)),
    )(x_t, *weights)

    # Slice off sublane / lane padding and return batch-major (N, out_dim).
    return out_t[:out_dim, :N].T


# ------------------------- references (pure JAX) -------------------------

def basic_decoder_ref(x, params):
    """Exact f32 mirror of the PyTorch forward."""
    (w0, b0, w1, b1, w2, b2, w3, b3, wo, bo) = params
    act = lambda v: jnp.maximum(v, 0.0)
    h = act(x @ w0 + b0)
    h = act(h @ w1 + b1)
    h = act(h @ w2 + b2)
    h = jnp.concatenate([x, h], axis=-1)
    h = act(h @ w3 + b3)
    return h @ wo + bo


def basic_decoder_ref_mxu(x, params, matmul_dtype=jnp.bfloat16):
    """Mirror of the kernel arithmetic: bf16 matmul operands, f32 accumulate."""
    (w0, b0, w1, b1, w2, b2, w3, b3, wo, bo) = params
    act = lambda v: jnp.maximum(v, 0.0)
    dot = lambda a, b: jnp.dot(a.astype(matmul_dtype), b.astype(matmul_dtype),
                               preferred_element_type=jnp.float32)
    h = act(dot(x, w0) + b0)
    h = act(dot(h, w1) + b1)
    h = act(dot(h, w2) + b2)
    h = jnp.concatenate([x, h], axis=-1)
    h = act(dot(h, w3) + b3)
    return dot(h, wo) + bo


# ------------------------- param init -------------------------

def init_params(key, input_dim, hidden_dim, output_dim):
    ks = jax.random.split(key, 10)

    def lin(kw, kb, fan_in, fan_out):
        bound = 1.0 / jnp.sqrt(fan_in)
        w = jax.random.uniform(kw, (fan_in, fan_out), jnp.float32, -bound, bound)
        b = jax.random.uniform(kb, (1, fan_out), jnp.float32, -bound, bound)
        return w, b

    w0, b0 = lin(ks[0], ks[1], input_dim, hidden_dim)
    w1, b1 = lin(ks[2], ks[3], hidden_dim, hidden_dim)
    w2, b2 = lin(ks[4], ks[5], hidden_dim, hidden_dim - input_dim)
    w3, b3 = lin(ks[6], ks[7], hidden_dim, hidden_dim)
    wo, bo = lin(ks[8], ks[9], hidden_dim, output_dim)
    return (w0, b0, w1, b1, w2, b2, w3, b3, wo, bo)


# ------------------------- main -------------------------

if __name__ == "__main__":
    # Small config consistent with the module's forward: x is (N, input_dim).
    # N is deliberately not a multiple of 128 to exercise the padded grid.
    N, INPUT_DIM, HIDDEN_DIM, OUTPUT_DIM = 3000, 4, 32, 1

    key = jax.random.PRNGKey(0)
    kx, kp = jax.random.split(key)
    x = jax.random.normal(kx, (N, INPUT_DIM), dtype=jnp.float32)
    params = init_params(kp, INPUT_DIM, HIDDEN_DIM, OUTPUT_DIM)

    out = basic_decoder(x, params)          # default tm -> 4 parallel lane-tiles
    out = jax.block_until_ready(out)
    assert out.shape == (N, OUTPUT_DIM)

    ref_mxu = basic_decoder_ref_mxu(x, params)   # same bf16-operand arithmetic
    ref_f32 = basic_decoder_ref(x, params)       # exact module semantics (f32)
    # Tolerance note: the kernel contracts in feature-major order, so f32
    # accumulation order (and hence occasional bf16 rounding of activations)
    # can differ harmlessly from the batch-major XLA reference.
    assert jnp.allclose(out, ref_mxu, atol=5e-3, rtol=5e-3), \
        "mismatch vs bf16-operand reference"
    assert jnp.allclose(out, ref_f32, atol=1e-1, rtol=1e-1), \
        "mismatch vs f32 reference"
    print("KERNEL_OK")
</pallas_src>

<mosaic_0001>
module attributes {stable_mosaic.version = 11 : i64} {
  func.func @_basic_decoder_kernel(%arg0: i32, %arg1: memref<32x768xbf16, #tpu.memory_space<vmem>>, %arg2: memref<32x32xbf16, #tpu.memory_space<vmem>>, %arg3: memref<32x1xf32, #tpu.memory_space<vmem>>, %arg4: memref<32x32xbf16, #tpu.memory_space<vmem>>, %arg5: memref<32x1xf32, #tpu.memory_space<vmem>>, %arg6: memref<32x32xbf16, #tpu.memory_space<vmem>>, %arg7: memref<32x1xf32, #tpu.memory_space<vmem>>, %arg8: memref<32x32xbf16, #tpu.memory_space<vmem>>, %arg9: memref<32x1xf32, #tpu.memory_space<vmem>>, %arg10: memref<8x32xbf16, #tpu.memory_space<vmem>>, %arg11: memref<8x1xf32, #tpu.memory_space<vmem>>, %arg12: memref<8x768xf32, #tpu.memory_space<vmem>>) attributes {dimension_semantics = [#tpu.dimension_semantics<parallel>], iteration_bounds = array<i64: 4>, scalar_prefetch = 0 : i64, scratch_operands = 0 : i64, tpu.core_type = #tpu.core_type<tc>, window_params = [{transform_indices = @transform_0, window_bounds = array<i64: 32, 768>}, {pipeline_mode = #tpu.pipeline_mode<synchronous>, transform_indices = @transform_1, window_bounds = array<i64: 32, 32>}, {pipeline_mode = #tpu.pipeline_mode<synchronous>, transform_indices = @transform_2, window_bounds = array<i64: 32, 1>}, {pipeline_mode = #tpu.pipeline_mode<synchronous>, transform_indices = @transform_3, window_bounds = array<i64: 32, 32>}, {pipeline_mode = #tpu.pipeline_mode<synchronous>, transform_indices = @transform_4, window_bounds = array<i64: 32, 1>}, {pipeline_mode = #tpu.pipeline_mode<synchronous>, transform_indices = @transform_5, window_bounds = array<i64: 32, 32>}, {pipeline_mode = #tpu.pipeline_mode<synchronous>, transform_indices = @transform_6, window_bounds = array<i64: 32, 1>}, {pipeline_mode = #tpu.pipeline_mode<synchronous>, transform_indices = @transform_7, window_bounds = array<i64: 32, 32>}, {pipeline_mode = #tpu.pipeline_mode<synchronous>, transform_indices = @transform_8, window_bounds = array<i64: 32, 1>}, {pipeline_mode = #tpu.pipeline_mode<synchronous>, transform_indices = @transform_9, window_bounds = array<i64: 8, 32>}, {pipeline_mode = #tpu.pipeline_mode<synchronous>, transform_indices = @transform_10, window_bounds = array<i64: 8, 1>}, {transform_indices = @transform_11, window_bounds = array<i64: 8, 768>}]} {
    %c0 = arith.constant 0 : index
    %c0_0 = arith.constant 0 : index
    %0 = vector.load %arg1[%c0, %c0_0] : memref<32x768xbf16, #tpu.memory_space<vmem>>, vector<32x768xbf16>
    %c0_1 = arith.constant 0 : index
    %c0_2 = arith.constant 0 : index
    %1 = vector.load %arg2[%c0_1, %c0_2] : memref<32x32xbf16, #tpu.memory_space<vmem>>, vector<32x32xbf16>
    %cst = arith.constant dense<0.000000e+00> : vector<32x768xf32>
    %2 = tpu.matmul %1, %0, %cst {dimension_numbers = #tpu.dot_dimension_numbers<[1], [0], [0], [1], [0, 0, 1, 1], [], []>} : vector<32x32xbf16>, vector<32x768xbf16>, vector<32x768xf32> -> vector<32x768xf32>
    %c0_3 = arith.constant 0 : index
    %c0_4 = arith.constant 0 : index
    %3 = vector.load %arg3[%c0_3, %c0_4] : memref<32x1xf32, #tpu.memory_space<vmem>>, vector<32x1xf32>
    %4 = vector.broadcast %3 : vector<32x1xf32> to vector<32x768xf32>
    %5 = arith.addf %2, %4 : vector<32x768xf32>
    %cst_5 = arith.constant 0.000000e+00 : f32
    %6 = vector.broadcast %cst_5 : f32 to vector<32x768xf32>
    %7 = arith.maximumf %5, %6 : vector<32x768xf32>
    %c0_6 = arith.constant 0 : index
    %c0_7 = arith.constant 0 : index
    %8 = vector.load %arg4[%c0_6, %c0_7] : memref<32x32xbf16, #tpu.memory_space<vmem>>, vector<32x32xbf16>
    %9 = arith.truncf %7 : vector<32x768xf32> to vector<32x768xbf16>
    %cst_8 = arith.constant dense<0.000000e+00> : vector<32x768xf32>
    %10 = tpu.matmul %8, %9, %cst_8 {dimension_numbers = #tpu.dot_dimension_numbers<[1], [0], [0], [1], [0, 0, 1, 1], [], []>} : vector<32x32xbf16>, vector<32x768xbf16>, vector<32x768xf32> -> vector<32x768xf32>
    %c0_9 = arith.constant 0 : index
    %c0_10 = arith.constant 0 : index
    %11 = vector.load %arg5[%c0_9, %c0_10] : memref<32x1xf32, #tpu.memory_space<vmem>>, vector<32x1xf32>
    %12 = vector.broadcast %11 : vector<32x1xf32> to vector<32x768xf32>
    %13 = arith.addf %10, %12 : vector<32x768xf32>
    %cst_11 = arith.constant 0.000000e+00 : f32
    %14 = vector.broadcast %cst_11 : f32 to vector<32x768xf32>
    %15 = arith.maximumf %13, %14 : vector<32x768xf32>
    %c0_12 = arith.constant 0 : index
    %c0_13 = arith.constant 0 : index
    %16 = vector.load %arg6[%c0_12, %c0_13] : memref<32x32xbf16, #tpu.memory_space<vmem>>, vector<32x32xbf16>
    %17 = arith.truncf %15 : vector<32x768xf32> to vector<32x768xbf16>
    %cst_14 = arith.constant dense<0.000000e+00> : vector<32x768xf32>
    %18 = tpu.matmul %16, %17, %cst_14 {dimension_numbers = #tpu.dot_dimension_numbers<[1], [0], [0], [1], [0, 0, 1, 1], [], []>} : vector<32x32xbf16>, vector<32x768xbf16>, vector<32x768xf32> -> vector<32x768xf32>
    %c0_15 = arith.constant 0 : index
    %c0_16 = arith.constant 0 : index
    %19 = vector.load %arg7[%c0_15, %c0_16] : memref<32x1xf32, #tpu.memory_space<vmem>>, vector<32x1xf32>
    %20 = vector.broadcast %19 : vector<32x1xf32> to vector<32x768xf32>
    %21 = arith.addf %18, %20 : vector<32x768xf32>
    %cst_17 = arith.constant 0.000000e+00 : f32
    %22 = vector.broadcast %cst_17 : f32 to vector<32x768xf32>
    %23 = arith.maximumf %21, %22 : vector<32x768xf32>
    %c0_18 = arith.constant 0 : index
    %c0_19 = arith.constant 0 : index
    %24 = vector.load %arg8[%c0_18, %c0_19] : memref<32x32xbf16, #tpu.memory_space<vmem>>, vector<32x32xbf16>
    %25 = arith.extf %0 : vector<32x768xbf16> to vector<32x768xf32>
    %26 = arith.addf %23, %25 : vector<32x768xf32>
    %27 = arith.truncf %26 : vector<32x768xf32> to vector<32x768xbf16>
    %cst_20 = arith.constant dense<0.000000e+00> : vector<32x768xf32>
    %28 = tpu.matmul %24, %27, %cst_20 {dimension_numbers = #tpu.dot_dimension_numbers<[1], [0], [0], [1], [0, 0, 1, 1], [], []>} : vector<32x32xbf16>, vector<32x768xbf16>, vector<32x768xf32> -> vector<32x768xf32>
    %c0_21 = arith.constant 0 : index
    %c0_22 = arith.constant 0 : index
    %29 = vector.load %arg9[%c0_21, %c0_22] : memref<32x1xf32, #tpu.memory_space<vmem>>, vector<32x1xf32>
    %30 = vector.broadcast %29 : vector<32x1xf32> to vector<32x768xf32>
    %31 = arith.addf %28, %30 : vector<32x768xf32>
    %cst_23 = arith.constant 0.000000e+00 : f32
    %32 = vector.broadcast %cst_23 : f32 to vector<32x768xf32>
    %33 = arith.maximumf %31, %32 : vector<32x768xf32>
    %c0_24 = arith.constant 0 : index
    %c0_25 = arith.constant 0 : index
    %34 = vector.load %arg10[%c0_24, %c0_25] : memref<8x32xbf16, #tpu.memory_space<vmem>>, vector<8x32xbf16>
    %35 = arith.truncf %33 : vector<32x768xf32> to vector<32x768xbf16>
    %cst_26 = arith.constant dense<0.000000e+00> : vector<8x768xf32>
    %36 = tpu.matmul %34, %35, %cst_26 {dimension_numbers = #tpu.dot_dimension_numbers<[1], [0], [0], [1], [0, 0, 1, 1], [], []>} : vector<8x32xbf16>, vector<32x768xbf16>, vector<8x768xf32> -> vector<8x768xf32>
    %c0_27 = arith.constant 0 : index
    %c0_28 = arith.constant 0 : index
    %37 = vector.load %arg11[%c0_27, %c0_28] : memref<8x1xf32, #tpu.memory_space<vmem>>, vector<8x1xf32>
    %38 = vector.broadcast %37 : vector<8x1xf32> to vector<8x768xf32>
    %39 = arith.addf %36, %38 : vector<8x768xf32>
    %c0_29 = arith.constant 0 : index
    %c0_30 = arith.constant 0 : index
    %40 = vector.load %arg12[%c0_29, %c0_30] : memref<8x768xf32, #tpu.memory_space<vmem>>, vector<8x768xf32>
    tpu.vector_store %arg12[%c0_29, %c0_30], %39 {strides = array<i32>} : memref<8x768xf32, #tpu.memory_space<vmem>>, vector<8x768xf32>,
    return
  }
  func.func @transform_0(%arg0: i32) -> (i32, i32) {
    %c0_i32 = arith.constant 0 : i32
    %c0_i32_0 = arith.constant 0 : i32
    return %c0_i32, %arg0 : i32, i32
  }
  func.func @transform_1(%arg0: i32) -> (i32, i32) {
    %c0_i32 = arith.constant 0 : i32
    %c0_i32_0 = arith.constant 0 : i32
    %c0_i32_1 = arith.constant 0 : i32
    return %c0_i32, %c0_i32_0 : i32, i32
  }
  func.func @transform_2(%arg0: i32) -> (i32, i32) {
    %c0_i32 = arith.constant 0 : i32
    %c0_i32_0 = arith.constant 0 : i32
    %c0_i32_1 = arith.constant 0 : i32
    return %c0_i32, %c0_i32_0 : i32, i32
  }
  func.func @transform_3(%arg0: i32) -> (i32, i32) {
    %c0_i32 = arith.constant 0 : i32
    %c0_i32_0 = arith.constant 0 : i32
    %c0_i32_1 = arith.constant 0 : i32
    return %c0_i32, %c0_i32_0 : i32, i32
  }
  func.func @transform_4(%arg0: i32) -> (i32, i32) {
    %c0_i32 = arith.constant 0 : i32
    %c0_i32_0 = arith.constant 0 : i32
    %c0_i32_1 = arith.constant 0 : i32
    return %c0_i32, %c0_i32_0 : i32, i32
  }
  func.func @transform_5(%arg0: i32) -> (i32, i32) {
    %c0_i32 = arith.constant 0 : i32
    %c0_i32_0 = arith.constant 0 : i32
    %c0_i32_1 = arith.constant 0 : i32
    return %c0_i32, %c0_i32_0 : i32, i32
  }
  func.func @transform_6(%arg0: i32) -> (i32, i32) {
    %c0_i32 = arith.constant 0 : i32
    %c0_i32_0 = arith.constant 0 : i32
    %c0_i32_1 = arith.constant 0 : i32
    return %c0_i32, %c0_i32_0 : i32, i32
  }
  func.func @transform_7(%arg0: i32) -> (i32, i32) {
    %c0_i32 = arith.constant 0 : i32
    %c0_i32_0 = arith.constant 0 : i32
    %c0_i32_1 = arith.constant 0 : i32
    return %c0_i32, %c0_i32_0 : i32, i32
  }
  func.func @transform_8(%arg0: i32) -> (i32, i32) {
    %c0_i32 = arith.constant 0 : i32
    %c0_i32_0 = arith.constant 0 : i32
    %c0_i32_1 = arith.constant 0 : i32
    return %c0_i32, %c0_i32_0 : i32, i32
  }
  func.func @transform_9(%arg0: i32) -> (i32, i32) {
    %c0_i32 = arith.constant 0 : i32
    %c0_i32_0 = arith.constant 0 : i32
    %c0_i32_1 = arith.constant 0 : i32
    return %c0_i32, %c0_i32_0 : i32, i32
  }
  func.func @transform_10(%arg0: i32) -> (i32, i32) {
    %c0_i32 = arith.constant 0 : i32
    %c0_i32_0 = arith.constant 0 : i32
    %c0_i32_1 = arith.constant 0 : i32
    return %c0_i32, %c0_i32_0 : i32, i32
  }
  func.func @transform_11(%arg0: i32) -> (i32, i32) {
    %c0_i32 = arith.constant 0 : i32
    %c0_i32_0 = arith.constant 0 : i32
    return %c0_i32, %arg0 : i32, i32
  }
}

</mosaic_0001>

<bundles_post_ra>
// kernel: basic_decoder.1
= control target key start
LH: loop header
LB: loop body
LE: loop exit
PB: predicated region body
PF: predicated region fallthrough
CT: control target
= control target key end

     0   :  { %s1901_s17 = smov 0   ;;  %s1903_s18 = smov 0   ;;  %s2305_s0 = inlined_call_operand.vmem [shape: bf16[32,3072], index: 0, kind: input, shape index: {}]   ;;  %s2306_s1 = inlined_call_operand.vmem [shape: bf16[32,32], index: 1, kind: input, shape index: {}]   ;;  %s2307_s2 = inlined_call_operand.vmem [shape: f32[32,1], index: 2, kind: input, shape index: {}]   ;;  %s2308_s3 = inlined_call_operand.vmem [shape: bf16[32,32], index: 3, kind: input, shape index: {}]   ;;  %s2309_s4 = inlined_call_operand.vmem [shape: f32[32,1], index: 4, kind: input, shape index: {}]   ;;  %s2310_s5 = inlined_call_operand.vmem [shape: bf16[32,32], index: 5, kind: input, shape index: {}]   ;;  %s2311_s6 = inlined_call_operand.vmem [shape: f32[32,1], index: 6, kind: input, shape index: {}]   ;;  %s2312_s7 = inlined_call_operand.vmem [shape: bf16[32,32], index: 7, kind: input, shape index: {}]   ;;  %s2313_s8 = inlined_call_operand.vmem [shape: f32[32,1], index: 8, kind: input, shape index: {}]   ;;  %s2314_s9 = inlined_call_operand.vmem [shape: bf16[8,32], index: 9, kind: input, shape index: {}]   ;;  %s2315_s10 = inlined_call_operand.vmem [shape: f32[8,1], index: 10, kind: input, shape index: {}]   ;;  %s2316_s11 = inlined_call_operand.vmem [shape: f32[8,3072], index: 11, kind: output, shape index: {}]  }
   0x1   :  { %s1905_s19 = smov 0  }
   0x2 LB: > { %s1710_s20 = sadd.s32 4294967295, %s1838_s19   ;;  %s1918_s21 = sadd.s32 1, %s1838_s19   ;;  %s1838_s19 = sphi %s1905_s19, %s2319_s19   ;;  %s1834_s18 = sphi %s1903_s18, %s2318_s18   ;;  %s1830_s17 = sphi %s1901_s17, %s2317_s17  }
   0x3   : > { %s25_s22 = ssub.s32 %s1838_s19, %s1918_s21  ;;  %s28_s23 = sadd.s32 1, %s1834_s18 }
   0x4   : > { %p26_p0 = scmp.eq.s32.totalorder %s25_s22, 0  ;;  %p35_p1 = scmp.ne.s32.totalorder %s1834_s18, %s1830_s17 }
   0x5   : > { %p36_p2 = scmp.eq.s32.totalorder %s1838_s19, 0  ;;  %p1713_p4 = scmp.ge.s32.totalorder %s1838_s19, 4 }
   0x6   : > { %s1927_s24 = scalar_select %p26_p0, %s1834_s18, %s28_s23  }
   0x7   : > { %p37_p3 = por %p36_p2, %p35_p1  ;;  %327 = sbr.rel (%p1713_p4) target bundleno = 25 (0x19), region = 56 }
   0xe   : > { %330 = sbr.rel (!%p37_p3) target bundleno = 25 (0x19), region = 60  ;;  %s332_s25 = sand.u32 (%p37_p3), 1, %s1834_s18  }
   0xf   : > { %s1766_s26 = smul.u32 (%p37_p3), 24, %s1838_s19 }
  0x10   : > { %s1767_s27 = smul.u32 (%p37_p3), 96, %s332_s25 }
  0x11   : > { %s337_s30 = scalar_lea.vmem (%p37_p3), %s2305_s0, %s1766_s26 }
  0x12   : > { %v350_v0 = vld [vmem:[%s337_s30] sm:$0xff] (%p37_p3)  ;;  %v352_v1 = vld [vmem:[%s337_s30 + $0x8] sm:$0xff] (%p37_p3)  ;;  %v354_v2 = vld [vmem:[%s337_s30 + $0x10] sm:$0xff] (%p37_p3)  ;;  %s334_s12 = scalar_lea.vmem (%p37_p3), [#allocation2], %s1767_s27 }
  0x13   : > { %351 = vst [vmem:[%s334_s12] sm:$0xff] (%p37_p3), %v350_v0  ;;  %353 = vst [vmem:[%s334_s12 + $0x8] sm:$0xff] (%p37_p3), %v352_v1  ;;  %v356_v3 = vld [vmem:[%s337_s30 + $0x60] sm:$0xff] (%p37_p3)  ;;  %v358_v4 = vld [vmem:[%s337_s30 + $0x68] sm:$0xff] (%p37_p3) }
  0x14   : > { %355 = vst [vmem:[%s334_s12 + $0x10] sm:$0xff] (%p37_p3), %v354_v2  ;;  %v360_v5 = vld [vmem:[%s337_s30 + $0x70] sm:$0xff] (%p37_p3)  ;;  %357 = vst [vmem:[%s334_s12 + $0x18] sm:$0xff] (%p37_p3), %v356_v3  ;;  %v362_v6 = vld [vmem:[%s337_s30 + $0xc0] sm:$0xff] (%p37_p3) }
  0x15   : > { %359 = vst [vmem:[%s334_s12 + $0x20] sm:$0xff] %v358_v4  ;;  %361 = vst [vmem:[%s334_s12 + $0x28] sm:$0xff] %v360_v5  ;;  %v364_v7 = vld [vmem:[%s337_s30 + $0xc8] sm:$0xff]  ;;  %v366_v8 = vld [vmem:[%s337_s30 + $0xd0] sm:$0xff] }
  0x16   : > { %363 = vst [vmem:[%s334_s12 + $0x30] sm:$0xff] %v362_v6  ;;  %365 = vst [vmem:[%s334_s12 + $0x38] sm:$0xff] %v364_v7  ;;  %v368_v9 = vld [vmem:[%s337_s30 + $0x120] sm:$0xff]  ;;  %v370_v10 = vld [vmem:[%s337_s30 + $0x128] sm:$0xff] }
  0x17   : > { %367 = vst [vmem:[%s334_s12 + $0x40] sm:$0xff] %v366_v8  ;;  %v372_v11 = vld [vmem:[%s337_s30 + $0x130] sm:$0xff]  ;;  %369 = vst [vmem:[%s334_s12 + $0x48] sm:$0xff] %v368_v9 }
  0x18   : > { %371 = vst [vmem:[%s334_s12 + $0x50] sm:$0xff] %v370_v10  ;;  %373 = vst [vmem:[%s334_s12 + $0x58] sm:$0xff] %v372_v11 }
  0x19 PF: > { %p1715_p5 = scmp.ge.s32.totalorder %s1838_s19, 1  ;;  %p378_p6 = scmp.lt.s32.totalorder %s1838_s19, 5 }
  0x1b   : > { %p379_p7 = pnand %p1715_p5, %p378_p6 }
  0x1c   : > { %s385_s13 = sand.u32 (!%p379_p7), 1, %s1830_s17   ;;  %v1840_v12 = vmov (!%p379_p7), 0   ;;  %v448_v13 = vld [vmem:[%s2307_s2] sm:$0xff] (!%p379_p7)  ;;  %v449_v14 = vld [vmem:[%s2307_s2 + $0x8] sm:$0xff] (!%p379_p7)  ;;  %v450_v15 = vld [vmem:[%s2307_s2 + $0x10] sm:$0xff] (!%p379_p7)  ;;  %vm542_vm0 = vcmask (!%p379_p7), 261120  }
  0x1d   : > { %382 = sbr.rel (%p379_p7) target bundleno = 1210 (0x4ba), region = 83  ;;  %581 = vmatprep.mubr.bf16.mxu0 (!%p379_p7), %v1840_v12  ;;  %634 = vmatprep.mubr.bf16.mxu1 (!%p379_p7), %v1840_v12  ;;  %v748_v33 = vld [vmem:[%s2309_s4] sm:$0xff] (!%p379_p7)  ;;  %v451_v34 = vld [vmem:[%s2307_s2 + $0x18] sm:$0xff] (!%p379_p7)  ;;  %v750_v38 = vld [vmem:[%s2309_s4 + $0x10] sm:$0xff] (!%p379_p7) }
  0x1e   : > { %s1768_s14 = smul.u32 (!%p379_p7), 96, %s385_s13  ;;  %1794 = vset.pattern.permute.xlu0 (!%p379_p7), %v1840_v12  ;;  %1795 = vset.pattern.permute.xlu1 (!%p379_p7), %v1840_v12  ;;  %v1804_v37 = vld [vmem:[%s2306_s1] sm:$0xff] (!%p379_p7)   ;;  %v749_v41 = vld [vmem:[%s2309_s4 + $0x8] sm:$0xff] (!%p379_p7)  ;;  %v751_v43 = vld [vmem:[%s2309_s4 + $0x18] sm:$0xff] (!%p379_p7) }
  0x1f   : > { %454 = vperm.xlu0 (!%p379_p7), %1794, %v448_v13   ;;  %464 = vperm.xlu1 (!%p379_p7), %1795, %v450_v15   ;;  %v987_v46 = vld [vmem:[%s2311_s6] sm:$0xff] (!%p379_p7)  ;;  %v1807_v47 = vld [vmem:[%s2306_s1 + $0x8] sm:$0xff] (!%p379_p7)   ;;  %v989_v49 = vld [vmem:[%s2311_s6 + $0x10] sm:$0xff] (!%p379_p7)  ;;  %s425_s12 = smul.u32 (!%p379_p7), 6, %s1710_s20 }
  0x20   : > { %s1951_s26 = scalar_lea.vmem (!%p379_p7), [#allocation2], %s1768_s14  ;;  %v988_v48 = vld [vmem:[%s2311_s6 + $0x8] sm:$0xff] (!%p379_p7)  ;;  %v990_v50 = vld [vmem:[%s2311_s6 + $0x18] sm:$0xff] (!%p379_p7)  ;;  %v1274_v51 = vld [vmem:[%s2313_s8] sm:$0xff] (!%p379_p7) }
  0x21   : > { %v1954_v16 = vld [vmem:[%s1951_s26] sm:$0xff] (!%p379_p7)  ;;  %v1957_v17 = vld [vmem:[%s1951_s26 + $0x18] sm:$0xff] (!%p379_p7)  ;;  %v1960_v18 = vld [vmem:[%s1951_s26 + $0x8] sm:$0xff] (!%p379_p7)  ;;  %p426_p8 = scmp.lt.s32.totalorder (!%p379_p7), %s425_s12, 23 }
  0x22   : > { %v1720_v19 = vcombine.high (!%p379_p7), %v1954_v16, %v1957_v17  ;;  %v1965_v20 = vld [vmem:[%s1951_s26 + $0x20] sm:$0xff] (!%p379_p7)  ;;  %v1719_v21 = vcombine.low (!%p379_p7), %v1954_v16, %v1957_v17  ;;  %v1970_v22 = vld [vmem:[%s1951_s26 + $0x30] sm:$0xff] (!%p379_p7)  ;;  %v1973_v23 = vld [vmem:[%s1951_s26 + $0x48] sm:$0xff] (!%p379_p7) }
  0x23   : > { %v1722_v24 = vcombine.high (!%p379_p7), %v1960_v18, %v1965_v20  ;;  %v1721_v25 = vcombine.low (!%p379_p7), %v1960_v18, %v1965_v20  ;;  %v1726_v26 = vcombine.high (!%p379_p7), %v1970_v22, %v1973_v23  ;;  %v1982_v27 = vld [vmem:[%s1951_s26 + $0x38] sm:$0xff] (!%p379_p7)  ;;  %v1985_v28 = vld [vmem:[%s1951_s26 + $0x50] sm:$0xff] (!%p379_p7)  ;;  %v1993_v31 = vld [vmem:[%s1951_s26 + $0x28] sm:$0xff] (!%p379_p7)  ;;  %459 = vperm.xlu0 (!%p379_p7), %1794, %v449_v14   ;;  %v1725_v32 = vcombine.low (!%p379_p7), %v1970_v22, %v1973_v23 }
  0x24   : > { %v1988_v29 = vld [vmem:[%s1951_s26 + $0x10] sm:$0xff]  ;;  %549 = vmatprep.subr.bf16.mxu0 %v1720_v19  ;;  %v1728_v30 = vcombine.high %v1982_v27, %v1985_v28  ;;  %v1727_v35 = vcombine.low %v1982_v27, %v1985_v28  ;;  %469 = vperm.xlu1 %1795, %v451_v34   ;;  %v2014_v39 = vld [vmem:[%s1951_s26 + $0x40] sm:$0xff]  ;;  %v2017_v40 = vld [vmem:[%s1951_s26 + $0x58] sm:$0xff]  ;;  %s2321_s12 = smov (!%p426_p8, %s425_s12), 23 }
  0x25   : > { %602 = vmatprep.subr.bf16.mxu1 %v1722_v24  ;;  %550 = vmatpush1.bf16.msra.mxu0 %v1719_v21  ;;  %v1724_v36 = vcombine.high %v1988_v29, %v1993_v31  ;;  %v1723_v42 = vcombine.low %v1988_v29, %v1993_v31  ;;  %v1730_v44 = vcombine.high %v2014_v39, %v2017_v40  ;;  %v1275_v52 = vld [vmem:[%s2313_s8 + $0x8] sm:$0xff]  ;;  %v1276_v53 = vld [vmem:[%s2313_s8 + $0x10] sm:$0xff]  ;;  %v1277_v54 = vld [vmem:[%s2313_s8 + $0x18] sm:$0xff]  ;;  %s1716_s13 = sshll.u32 %s2321_s12, 3 }
  0x26   : > { %603 = vmatpush1.bf16.msra.mxu1 %v1721_v25  ;;  %551 = vmatprep.subr.bf16.mxu0 %v1726_v26  ;;  %v1729_v45 = vcombine.low %v2014_v39, %v2017_v40  ;;  %v1510_v55 = vld [vmem:[%s2315_s10] sm:$0xff]  ;;  %s429_s16 = scalar_lea.vmem %s2316_s11, %s1716_s13 }
  0x27   : > { %604 = vmatprep.subr.bf16.mxu1 %v1728_v30  ;;  %754 = vperm.xlu0 %1794, %v748_v33  }
  0x28   : > { %759 = vperm.xlu1 %1795, %v749_v41  }
  0x29   : > { %552 = vmatpush1.bf16.msra.mxu0 %v1725_v32 }
  0x2a   : > { %605 = vmatpush1.bf16.msra.mxu1 %v1727_v35  ;;  %655 = vmatprep.subr.bf16.mxu0 %v1724_v36 }
  0x2b   : > { %764 = vperm.xlu0 %1794, %v750_v38  }
  0x2c   : > { %1731 = vmatmul.mubr.msk.bf16.vlgmr.msra.gmra.mrb[0].mxu0 %vm542_vm0, %v1804_v37  ;;  %769 = vperm.xlu1 %1795, %v751_v43  }
  0x2d   : > { %1733 = vmatmul.mubr.msk.bf16.vlgmr.msra.gmra.mrb[0].mxu1 %vm542_vm0, %v1804_v37  ;;  %656 = vmatpush1.bf16.msra.mxu0 %v1723_v42 }
  0x2e   : > { %591 = vmatprep.mubr.bf16.mxu0 %v1840_v12  ;;  %644 = vmatprep.mubr.bf16.mxu1 %v1840_v12 }
  0x2f   : > { %657 = vmatprep.subr.bf16.mxu0 %v1730_v44  ;;  %993 = vperm.xlu0 %1794, %v987_v46  }
  0x30   : > { %998 = vperm.xlu1 %1795, %v988_v48  }
  0x31   : > { %658 = vmatpush1.bf16.msra.mxu0 %v1729_v45 }
  0x33   : > { %1003 = vperm.xlu0 %1794, %v989_v49  }
  0x34   : > { %1732 = vmatmul.mubr.msk.bf16.gmra.mrb[4].mxu0 %vm542_vm0, %v1807_v47  ;;  %1008 = vperm.xlu1 %1795, %v990_v50  }
  0x35   : > { %1734 = vmatmul.mubr.msk.bf16.gmra.mrb[4].mxu1 %vm542_vm0, %v1807_v47  ;;  %687 = vmatprep.mubr.bf16.mxu0 %v1840_v12 }
  0x36   : > { %820 = vmatprep.mubr.bf16.mxu1 %v1840_v12 }
  0x37   : > { %1280 = vperm.xlu0 %1794, %v1274_v51  }
  0x38   : > { %1285 = vperm.xlu1 %1795, %v1275_v52  }
  0x3b   : > { %1290 = vperm.xlu0 %1794, %v1276_v53  }
  0x3c   : > { %1735 = vmatmul.mubr.msk.bf16.vlgmr.msra.gmra.mrb[8].mxu0 %vm542_vm0, %v1804_v37  ;;  %1295 = vperm.xlu1 %1795, %v1277_v54  }
  0x3d   : > { %697 = vmatprep.mubr.bf16.mxu0 %v1840_v12 }
  0x3f   : > { %1513 = vperm.xlu0 %1794, %v1510_v55  }
  0x44   : > { %1736 = vmatmul.mubr.msk.bf16.gmra.mrb[12].mxu0 %vm542_vm0, %v1807_v47 }
  0x45   : > { %873 = vmatprep.mubr.bf16.mxu0 %v1840_v12 }
  0x9e   : > { %v2073_v56 = vpop.permute.xlu0 %454  ;;  %v2075_v57 = vpop.permute.xlu1 %464 }
  0xa2   : > { %v2077_v58 = vpop.permute.xlu0 %459 }
  0xa3   : > { %v2087_v30 = vpop.permute.xlu1 %469 }
  0xff   : > { %v583_v59 = vpop.f32.mrb[0].mxu0 }
 0x100   : > { %v584_v60 = vadd.f32 %v583_v59, %v2073_v56  ;;  %v636_v61 = vpop.f32.mrb[0].mxu1  ;;  %v585_v62 = vpop.f32.mrb[1].mxu0 }
 0x101   : > { %v637_v63 = vadd.f32 %v636_v61, %v2073_v56  ;;  %v586_v0 = vadd.f32 %v585_v62, %v2073_v56  ;;  %v638_v1 = vpop.f32.mrb[1].mxu1  ;;  %v587_v2 = vpop.f32.mrb[2].mxu0 }
 0x102   : > { %v639_v3 = vadd.f32 %v638_v1, %v2073_v56  ;;  %v588_v4 = vadd.f32 %v587_v2, %v2077_v58  ;;  %v640_v5 = vpop.f32.mrb[2].mxu1  ;;  %v589_v6 = vpop.f32.mrb[3].mxu0  ;;  %v708_v11 = vmax.f32 %v584_v60, 0.0 }
 0x103   : > { %v710_v7 = vmax.f32 %v637_v63, 0.0  ;;  %v641_v8 = vadd.f32 %v640_v5, %v2077_v58  ;;  %v590_v9 = vadd.f32 %v589_v6, %v2077_v58  ;;  %v642_v10 = vpop.f32.mrb[3].mxu1  ;;  %v709_v19 = vmax.f32 %v586_v0, 0.0 }
 0x104   : > { %v711_v13 = vmax.f32 %v639_v3, 0.0  ;;  %v714_v14 = vmax.f32 %v588_v4, 0.0  ;;  %v643_v15 = vadd.f32 %v642_v10, %v2077_v58 }
 0x105   : > { %v716_v21 = vmax.f32 %v641_v8, 0.0  ;;  %v715_v24 = vmax.f32 %v590_v9, 0.0  ;;  %v1810_v9 = vld [vmem:[%s2308_s3] sm:$0xff]  }
 0x106   : > { %v736_v25 = vpack.c.bf16 %v714_v14, %v708_v11  ;;  %v717_v26 = vmax.f32 %v643_v15, 0.0 }
 0x107   : > { %v738_v32 = vpack.c.bf16 %v716_v21, %v710_v7  ;;  %v737_v33 = vpack.c.bf16 %v715_v24, %v709_v19  ;;  %v593_v34 = vpop.f32.mrb[4].mxu0 }
 0x108   : > { %v739_v35 = vpack.c.bf16 %v717_v26, %v711_v13  ;;  %v594_v36 = vadd.f32 %v593_v34, %v2075_v57  ;;  %v646_v37 = vpop.f32.mrb[4].mxu1  ;;  %v595_v38 = vpop.f32.mrb[5].mxu0  ;;  %v1811_v34 = vld [vmem:[%s2308_s3 + $0x8] sm:$0xff]  }
 0x109   : > { %v647_v41 = vadd.f32 %v646_v37, %v2075_v57  ;;  %v596_v42 = vadd.f32 %v595_v38, %v2075_v57  ;;  %v648_v43 = vpop.f32.mrb[5].mxu1  ;;  %v597_v44 = vpop.f32.mrb[6].mxu0  ;;  %788 = vmatprep.subr.bf16.mxu1 %v737_v33 }
 0x10a   : > { %v649_v45 = vadd.f32 %v648_v43, %v2075_v57  ;;  %v598_v46 = vadd.f32 %v597_v44, %v2087_v30  ;;  %v650_v47 = vpop.f32.mrb[6].mxu1  ;;  %841 = vmatprep.subr.bf16.mxu0 %v739_v35  ;;  %v599_v48 = vpop.f32.mrb[7].mxu0  ;;  %789 = vmatpush1.bf16.msra.mxu1 %v736_v25  ;;  %v720_v52 = vmax.f32 %v594_v36, 0.0 }
 0x10b   : > { %v651_v49 = vadd.f32 %v650_v47, %v2087_v30  ;;  %v600_v50 = vadd.f32 %v599_v48, %v2087_v30  ;;  %v652_v51 = vpop.f32.mrb[7].mxu1  ;;  %842 = vmatpush1.bf16.msra.mxu0 %v738_v32  ;;  %v722_v55 = vmax.f32 %v647_v41, 0.0  ;;  %v721_v59 = vmax.f32 %v596_v42, 0.0 }
 0x10c   : > { %v726_v53 = vmax.f32 %v598_v46, 0.0  ;;  %v653_v54 = vadd.f32 %v652_v51, %v2087_v30  ;;  %v723_v62 = vmax.f32 %v649_v45, 0.0  ;;  %v2125_v45 = vpop.permute.xlu1 %759 }
 0x10d   : > { %v728_v60 = vmax.f32 %v651_v49, 0.0  ;;  %v727_v61 = vmax.f32 %v600_v50, 0.0 }
 0x10e   : > { %v742_v63 = vpack.c.bf16 %v726_v53, %v720_v52  ;;  %v729_v0 = vmax.f32 %v653_v54, 0.0 }
 0x10f   : > { %v744_v1 = vpack.c.bf16 %v728_v60, %v722_v55  ;;  %v743_v2 = vpack.c.bf16 %v727_v61, %v721_v59  ;;  %v689_v3 = vpop.f32.mrb[8].mxu0 }
 0x110   : > { %v745_v4 = vpack.c.bf16 %v729_v0, %v723_v62  ;;  %v690_v5 = vadd.f32 %v689_v3, %v2073_v56  ;;  %v691_v6 = vpop.f32.mrb[9].mxu0 }
 0x111   : > { %v692_v7 = vadd.f32 %v691_v6, %v2073_v56  ;;  %v693_v8 = vpop.f32.mrb[10].mxu0  ;;  %790 = vmatprep.subr.bf16.mxu1 %v743_v2 }
 0x112   : > { %v694_v10 = vadd.f32 %v693_v8, %v2077_v58  ;;  %843 = vmatprep.subr.bf16.mxu0 %v745_v4  ;;  %v695_v11 = vpop.f32.mrb[11].mxu0  ;;  %791 = vmatpush1.bf16.msra.mxu1 %v742_v63  ;;  %v712_v14 = vmax.f32 %v690_v5, 0.0 }
 0x113   : > { %v696_v13 = vadd.f32 %v695_v11, %v2077_v58  ;;  %844 = vmatpush1.bf16.msra.mxu0 %v744_v1  ;;  %v713_v19 = vmax.f32 %v692_v7, 0.0  ;;  %v2137_v11 = vpop.permute.xlu1 %769 }
 0x114   : > { %v718_v15 = vmax.f32 %v694_v10, 0.0 }
 0x115   : > { %v719_v21 = vmax.f32 %v696_v13, 0.0  ;;  %1739 = vmatmul.mubr.msk.bf16.vlgmr.msra.gmra.mrb[8].mxu1 %vm542_vm0, %v1810_v9 }
 0x116   : > { %v740_v56 = vpack.c.bf16 %v718_v15, %v712_v14  ;;  %1741 = vmatmul.mubr.msk.bf16.vlgmr.msra.gmra.mrb[16].mxu0 %vm542_vm0, %v1810_v9  ;;  %830 = vmatprep.mubr.bf16.mxu1 %v1840_v12 }
 0x117   : > { %v741_v24 = vpack.c.bf16 %v719_v21, %v713_v19  ;;  %v699_v25 = vpop.f32.mrb[12].mxu0  ;;  %883 = vmatprep.mubr.bf16.mxu0 %v1840_v12 }
 0x118   : > { %v700_v26 = vadd.f32 %v699_v25, %v2075_v57  ;;  %v701_v32 = vpop.f32.mrb[13].mxu0 }
 0x119   : > { %v702_v58 = vadd.f32 %v701_v32, %v2075_v57  ;;  %v703_v33 = vpop.f32.mrb[14].mxu0  ;;  %894 = vmatprep.subr.bf16.mxu1 %v741_v24 }
 0x11a   : > { %v704_v35 = vadd.f32 %v703_v33, %v2087_v30  ;;  %v705_v36 = vpop.f32.mrb[15].mxu0  ;;  %895 = vmatpush1.bf16.msra.mxu1 %v740_v56  ;;  %v724_v38 = vmax.f32 %v700_v26, 0.0 }
 0x11b   : > { %v706_v37 = vadd.f32 %v705_v36, %v2087_v30  ;;  %v725_v42 = vmax.f32 %v702_v58, 0.0  ;;  %v2123_v30 = vpop.permute.xlu0 %754 }
 0x11c   : > { %v730_v41 = vmax.f32 %v704_v35, 0.0 }
 0x11d   : > { %v731_v43 = vmax.f32 %v706_v37, 0.0  ;;  %1740 = vmatmul.mubr.msk.bf16.gmra.mrb[12].mxu1 %vm542_vm0, %v1811_v34 }
 0x11e   : > { %v746_v44 = vpack.c.bf16 %v730_v41, %v724_v38  ;;  %1742 = vmatmul.mubr.msk.bf16.gmra.mrb[20].mxu0 %vm542_vm0, %v1811_v34  ;;  %926 = vmatprep.mubr.bf16.mxu1 %v1840_v12 }
 0x11f   : > { %v747_v57 = vpack.c.bf16 %v731_v43, %v725_v42  ;;  %1059 = vmatprep.mubr.bf16.mxu0 %v1840_v12  ;;  %v2135_v7 = vpop.permute.xlu0 %764 }
 0x121   : > { %896 = vmatprep.subr.bf16.mxu1 %v747_v57 }
 0x122   : > { %897 = vmatpush1.bf16.msra.mxu1 %v746_v44 }
 0x125   : > { %1743 = vmatmul.mubr.msk.bf16.vlgmr.msra.gmra.mrb[16].mxu1 %vm542_vm0, %v1810_v9 }
 0x126   : > { %936 = vmatprep.mubr.bf16.mxu1 %v1840_v12 }
 0x12d   : > { %1744 = vmatmul.mubr.msk.bf16.gmra.mrb[20].mxu1 %vm542_vm0, %v1811_v34 }
 0x12e   : > { %1112 = vmatprep.mubr.bf16.mxu1 %v1840_v12 }
 0x1e8   : > { %v822_v46 = vpop.f32.mrb[8].mxu1 }
 0x1e9   : > { %v823_v47 = vadd.f32 %v822_v46, %v2123_v30  ;;  %v875_v48 = vpop.f32.mrb[16].mxu0  ;;  %v824_v49 = vpop.f32.mrb[9].mxu1 }
 0x1ea   : > { %v876_v50 = vadd.f32 %v875_v48, %v2123_v30  ;;  %v825_v51 = vadd.f32 %v824_v49, %v2123_v30  ;;  %v877_v52 = vpop.f32.mrb[17].mxu0  ;;  %v826_v53 = vpop.f32.mrb[10].mxu1 }
 0x1eb   : > { %v878_v54 = vadd.f32 %v877_v52, %v2123_v30  ;;  %v827_v55 = vadd.f32 %v826_v53, %v2125_v45  ;;  %v879_v59 = vpop.f32.mrb[18].mxu0  ;;  %v828_v60 = vpop.f32.mrb[11].mxu1  ;;  %v947_v0 = vmax.f32 %v823_v47, 0.0 }
 0x1ec   : > { %v880_v61 = vadd.f32 %v879_v59, %v2125_v45  ;;  %v829_v62 = vadd.f32 %v828_v60, %v2125_v45  ;;  %v881_v63 = vpop.f32.mrb[19].mxu0  ;;  %v949_v3 = vmax.f32 %v876_v50, 0.0  ;;  %v948_v4 = vmax.f32 %v825_v51, 0.0 }
 0x1ed   : > { %v953_v1 = vmax.f32 %v827_v55, 0.0  ;;  %v882_v2 = vadd.f32 %v881_v63, %v2125_v45  ;;  %v950_v8 = vmax.f32 %v878_v54, 0.0  ;;  %v1812_v63 = vld [vmem:[%s2310_s5] sm:$0xff]  }
 0x1ee   : > { %v955_v5 = vmax.f32 %v880_v61, 0.0  ;;  %v954_v6 = vmax.f32 %v829_v62, 0.0 }
 0x1ef   : > { %v975_v9 = vpack.c.bf16 %v953_v1, %v947_v0  ;;  %v956_v10 = vmax.f32 %v882_v2, 0.0 }
 0x1f0   : > { %v977_v13 = vpack.c.bf16 %v955_v5, %v949_v3  ;;  %v976_v14 = vpack.c.bf16 %v954_v6, %v948_v4  ;;  %v832_v15 = vpop.f32.mrb[12].mxu1 }
 0x1f1   : > { %v978_v19 = vpack.c.bf16 %v956_v10, %v950_v8  ;;  %v833_v21 = vadd.f32 %v832_v15, %v2135_v7  ;;  %v885_v56 = vpop.f32.mrb[20].mxu0  ;;  %v834_v24 = vpop.f32.mrb[13].mxu1  ;;  %v1813_v15 = vld [vmem:[%s2310_s5 + $0x8] sm:$0xff]  }
 0x1f2   : > { %v886_v25 = vadd.f32 %v885_v56, %v2135_v7  ;;  %v835_v26 = vadd.f32 %v834_v24, %v2135_v7  ;;  %v887_v32 = vpop.f32.mrb[21].mxu0  ;;  %v836_v58 = vpop.f32.mrb[14].mxu1  ;;  %1027 = vmatprep.subr.bf16.mxu0 %v976_v14 }
 0x1f3   : > { %v888_v33 = vadd.f32 %v887_v32, %v2135_v7  ;;  %v837_v34 = vadd.f32 %v836_v58, %v2137_v11  ;;  %v889_v35 = vpop.f32.mrb[22].mxu0  ;;  %1080 = vmatprep.subr.bf16.mxu1 %v978_v19  ;;  %v838_v36 = vpop.f32.mrb[15].mxu1  ;;  %1028 = vmatpush1.bf16.msra.mxu0 %v975_v9  ;;  %v959_v42 = vmax.f32 %v833_v21, 0.0 }
 0x1f4   : > { %v890_v37 = vadd.f32 %v889_v35, %v2137_v11  ;;  %v839_v38 = vadd.f32 %v838_v36, %v2137_v11  ;;  %v891_v41 = vpop.f32.mrb[23].mxu0  ;;  %1081 = vmatpush1.bf16.msra.mxu1 %v977_v13  ;;  %v961_v57 = vmax.f32 %v886_v25, 0.0  ;;  %v960_v46 = vmax.f32 %v835_v26, 0.0 }
 0x1f5   : > { %v965_v43 = vmax.f32 %v837_v34, 0.0  ;;  %v892_v44 = vadd.f32 %v891_v41, %v2137_v11  ;;  %v962_v49 = vmax.f32 %v888_v33, 0.0  ;;  %v1214_v33 = vunpack.c.l.bf16 %v1954_v16  ;;  %v2176_v34 = vpop.permute.xlu1 %998 }
 0x1f6   : > { %v967_v47 = vmax.f32 %v890_v37, 0.0  ;;  %v966_v48 = vmax.f32 %v839_v38, 0.0  ;;  %v1216_v36 = vunpack.c.l.bf16 %v1960_v18  ;;  %v1215_v37 = vunpack.c.h.bf16 %v1954_v16 }
 0x1f7   : > { %v981_v50 = vpack.c.bf16 %v965_v43, %v959_v42  ;;  %v968_v51 = vmax.f32 %v892_v44, 0.0  ;;  %v1217_v38 = vunpack.c.h.bf16 %v1960_v18  ;;  %v1220_v41 = vunpack.c.l.bf16 %v1957_v17 }
 0x1f8   : > { %v983_v52 = vpack.c.bf16 %v967_v47, %v961_v57  ;;  %v982_v53 = vpack.c.bf16 %v966_v48, %v960_v46  ;;  %v928_v54 = vpop.f32.mrb[16].mxu1  ;;  %v1222_v57 = vunpack.c.l.bf16 %v1965_v20  ;;  %v1221_v46 = vunpack.c.h.bf16 %v1957_v17 }
 0x1f9   : > { %v984_v55 = vpack.c.bf16 %v968_v51, %v962_v49  ;;  %v929_v59 = vadd.f32 %v928_v54, %v2123_v30  ;;  %v930_v60 = vpop.f32.mrb[17].mxu1  ;;  %v1223_v47 = vunpack.c.h.bf16 %v1965_v20  ;;  %v1226_v18 = vunpack.c.l.bf16 %v1970_v22 }
 0x1fa   : > { %v931_v61 = vadd.f32 %v930_v60, %v2123_v30  ;;  %v932_v62 = vpop.f32.mrb[18].mxu1  ;;  %1029 = vmatprep.subr.bf16.mxu0 %v982_v53  ;;  %v1228_v51 = vunpack.c.l.bf16 %v1982_v27  ;;  %v1227_v17 = vunpack.c.h.bf16 %v1970_v22 }
 0x1fb   : > { %v933_v0 = vadd.f32 %v932_v62, %v2125_v45  ;;  %1082 = vmatprep.subr.bf16.mxu1 %v984_v55  ;;  %v934_v1 = vpop.f32.mrb[19].mxu1  ;;  %1030 = vmatpush1.bf16.msra.mxu0 %v981_v50  ;;  %v951_v3 = vmax.f32 %v929_v59, 0.0 }
 0x1fc   : > { %v935_v2 = vadd.f32 %v934_v1, %v2125_v45  ;;  %1083 = vmatpush1.bf16.msra.mxu1 %v983_v52  ;;  %v952_v5 = vmax.f32 %v931_v61, 0.0 }
 0x1fd   : > { %v957_v4 = vmax.f32 %v933_v0, 0.0 }
 0x1fe   : > { %v958_v6 = vmax.f32 %v935_v2, 0.0  ;;  %1747 = vmatmul.mubr.msk.bf16.vlgmr.msra.gmra.mrb[24].mxu0 %vm542_vm0, %v1812_v63 }
 0x1ff   : > { %v979_v30 = vpack.c.bf16 %v957_v4, %v951_v3  ;;  %1749 = vmatmul.mubr.msk.bf16.vlgmr.msra.gmra.mrb[24].mxu1 %vm542_vm0, %v1812_v63  ;;  %1069 = vmatprep.mubr.bf16.mxu0 %v1840_v12  ;;  %v1229_v3 = vunpack.c.h.bf16 %v1982_v27 }
 0x200   : > { %v980_v8 = vpack.c.bf16 %v958_v6, %v952_v5  ;;  %v938_v9 = vpop.f32.mrb[20].mxu1  ;;  %1122 = vmatprep.mubr.bf16.mxu1 %v1840_v12  ;;  %v1232_v6 = vunpack.c.l.bf16 %v1973_v23 }
 0x201   : > { %v939_v10 = vadd.f32 %v938_v9, %v2135_v7  ;;  %v940_v13 = vpop.f32.mrb[21].mxu1 }
 0x202   : > { %v941_v45 = vadd.f32 %v940_v13, %v2135_v7  ;;  %v942_v14 = vpop.f32.mrb[22].mxu1  ;;  %1133 = vmatprep.subr.bf16.mxu0 %v980_v8 }
 0x203   : > { %v943_v19 = vadd.f32 %v942_v14, %v2137_v11  ;;  %v944_v21 = vpop.f32.mrb[23].mxu1  ;;  %1134 = vmatpush1.bf16.msra.mxu0 %v979_v30  ;;  %v963_v24 = vmax.f32 %v939_v10, 0.0  ;;  %v1234_v30 = vunpack.c.l.bf16 %v1985_v28  ;;  %v2202_v14 = vpop.permute.xlu1 %1008 }
 0x204   : > { %v945_v56 = vadd.f32 %v944_v21, %v2137_v11  ;;  %v964_v26 = vmax.f32 %v941_v45, 0.0  ;;  %v2173_v11 = vpop.permute.xlu0 %993  ;;  %v1233_v45 = vunpack.c.h.bf16 %v1973_v23 }
 0x205   : > { %v969_v25 = vmax.f32 %v943_v19, 0.0 }
 0x206   : > { %v970_v32 = vmax.f32 %v945_v56, 0.0  ;;  %1748 = vmatmul.mubr.msk.bf16.gmra.mrb[28].mxu0 %vm542_vm0, %v1813_v15 }
 0x207   : > { %v985_v58 = vpack.c.bf16 %v969_v25, %v963_v24  ;;  %1750 = vmatmul.mubr.msk.bf16.gmra.mrb[28].mxu1 %vm542_vm0, %v1813_v15  ;;  %1165 = vmatprep.mubr.bf16.mxu0 %v1840_v12 }
 0x208   : > { %v986_v7 = vpack.c.bf16 %v970_v32, %v964_v26  ;;  %1346 = vmatprep.mubr.bf16.mxu1 %v1840_v12  ;;  %v2199_v8 = vpop.permute.xlu0 %1003 }
 0x20a   : > { %1135 = vmatprep.subr.bf16.mxu0 %v986_v7 }
 0x20b   : > { %1136 = vmatpush1.bf16.msra.mxu0 %v985_v58 }
 0x20e   : > { %1751 = vmatmul.mubr.msk.bf16.vlgmr.msra.gmra.mrb[32].mxu0 %vm542_vm0, %v1812_v63 }
 0x20f   : > { %1175 = vmatprep.mubr.bf16.mxu0 %v1840_v12 }
 0x216   : > { %1752 = vmatmul.mubr.msk.bf16.gmra.mrb[36].mxu0 %vm542_vm0, %v1813_v15 }
 0x217   : > { %1399 = vmatprep.mubr.bf16.mxu0 %v1840_v12 }
 0x2d1   : > { %v1061_v35 = vpop.f32.mrb[24].mxu0 }
 0x2d2   : > { %v1062_v42 = vadd.f32 %v1061_v35, %v2173_v11  ;;  %v1114_v43 = vpop.f32.mrb[24].mxu1  ;;  %v1063_v44 = vpop.f32.mrb[25].mxu0 }
 0x2d3   : > { %v1115_v48 = vadd.f32 %v1114_v43, %v2173_v11  ;;  %v1064_v49 = vadd.f32 %v1063_v44, %v2173_v11  ;;  %v1116_v50 = vpop.f32.mrb[25].mxu1  ;;  %v1065_v16 = vpop.f32.mrb[26].mxu0 }
 0x2d4   : > { %v1186_v52 = vmax.f32 %v1062_v42, 0.0  ;;  %v1117_v53 = vadd.f32 %v1116_v50, %v2173_v11  ;;  %v1066_v54 = vadd.f32 %v1065_v16, %v2176_v34  ;;  %v1118_v55 = vpop.f32.mrb[26].mxu1  ;;  %v1067_v59 = vpop.f32.mrb[27].mxu0 }
 0x2d5   : > { %v1188_v20 = vmax.f32 %v1115_v48, 0.0  ;;  %v1187_v60 = vmax.f32 %v1064_v49, 0.0  ;;  %v1119_v61 = vadd.f32 %v1118_v55, %v2176_v34  ;;  %v1068_v62 = vadd.f32 %v1067_v59, %v2176_v34  ;;  %v1120_v63 = vpop.f32.mrb[27].mxu1 }
 0x2d6   : > { %v1189_v0 = vmax.f32 %v1117_v53, 0.0  ;;  %v1192_v1 = vmax.f32 %v1066_v54, 0.0  ;;  %v1121_v2 = vadd.f32 %v1120_v63, %v2176_v34  ;;  %v1238_v9 = vadd.f32 %v1214_v33, %v1186_v52 }
 0x2d7   : > { %v1194_v4 = vmax.f32 %v1119_v61, 0.0  ;;  %v1193_v5 = vmax.f32 %v1068_v62, 0.0  ;;  %v1240_v15 = vadd.f32 %v1216_v36, %v1188_v20  ;;  %v1239_v19 = vadd.f32 %v1215_v37, %v1187_v60 }
 0x2d8   : > { %v1244_v10 = vadd.f32 %v1220_v41, %v1192_v1  ;;  %v1195_v13 = vmax.f32 %v1121_v2, 0.0  ;;  %v1241_v25 = vadd.f32 %v1217_v38, %v1189_v0  ;;  %v1235_v59 = vunpack.c.h.bf16 %v1985_v28 }
 0x2d9   : > { %v1246_v21 = vadd.f32 %v1222_v57, %v1194_v4  ;;  %v1245_v56 = vadd.f32 %v1221_v46, %v1193_v5  ;;  %v1071_v24 = vpop.f32.mrb[28].mxu0 }
 0x2da   : > { %v1262_v26 = vpack.c.bf16 %v1244_v10, %v1238_v9  ;;  %v1247_v32 = vadd.f32 %v1223_v47, %v1195_v13  ;;  %v1072_v58 = vadd.f32 %v1071_v24, %v2199_v8  ;;  %v1124_v7 = vpop.f32.mrb[28].mxu1  ;;  %v1073_v35 = vpop.f32.mrb[29].mxu0 }
 0x2db   : > { %v1264_v42 = vpack.c.bf16 %v1246_v21, %v1240_v15  ;;  %v1125_v33 = vadd.f32 %v1124_v7, %v2199_v8  ;;  %v1074_v41 = vadd.f32 %v1073_v35, %v2199_v8  ;;  %v1126_v23 = vpop.f32.mrb[29].mxu1  ;;  %v1075_v43 = vpop.f32.mrb[30].mxu0  ;;  %v1263_v44 = vpack.c.bf16 %v1245_v56, %v1239_v19 }
 0x2dc   : > { %v1198_v36 = vmax.f32 %v1072_v58, 0.0  ;;  %v1127_v37 = vadd.f32 %v1126_v23, %v2199_v8  ;;  %v1076_v57 = vadd.f32 %v1075_v43, %v2202_v14  ;;  %v1128_v38 = vpop.f32.mrb[30].mxu1  ;;  %v1077_v46 = vpop.f32.mrb[31].mxu0  ;;  %v1265_v47 = vpack.c.bf16 %v1247_v32, %v1241_v25 }
 0x2dd   : > { %v1200_v48 = vmax.f32 %v1125_v33, 0.0  ;;  %v1199_v49 = vmax.f32 %v1074_v41, 0.0  ;;  %v1129_v50 = vadd.f32 %v1128_v38, %v2202_v14  ;;  %v1078_v16 = vadd.f32 %v1077_v46, %v2202_v14  ;;  %v1130_v52 = vpop.f32.mrb[31].mxu1  ;;  %1314 = vmatprep.subr.bf16.mxu1 %v1263_v44 }
 0x2de   : > { %v1201_v53 = vmax.f32 %v1127_v37, 0.0  ;;  %v1204_v54 = vmax.f32 %v1076_v57, 0.0  ;;  %v1131_v55 = vadd.f32 %v1130_v52, %v2202_v14  ;;  %1367 = vmatprep.subr.bf16.mxu0 %v1265_v47  ;;  %1315 = vmatpush1.bf16.msra.mxu1 %v1262_v26  ;;  %v1250_v61 = vadd.f32 %v1226_v18, %v1198_v36 }
 0x2df   : > { %v1206_v20 = vmax.f32 %v1129_v50, 0.0  ;;  %v1205_v60 = vmax.f32 %v1078_v16, 0.0  ;;  %1368 = vmatpush1.bf16.msra.mxu0 %v1264_v42  ;;  %v1252_v0 = vadd.f32 %v1228_v51, %v1200_v48  ;;  %v1251_v1 = vadd.f32 %v1227_v17, %v1199_v49 }
 0x2e0   : > { %v1256_v62 = vadd.f32 %v1232_v6, %v1204_v54  ;;  %v1207_v63 = vmax.f32 %v1131_v55, 0.0  ;;  %v1253_v9 = vadd.f32 %v1229_v3, %v1201_v53  ;;  %v1218_v21 = vunpack.c.l.bf16 %v1988_v29 }
 0x2e1   : > { %v1258_v2 = vadd.f32 %v1234_v30, %v1206_v20  ;;  %v1257_v4 = vadd.f32 %v1233_v45, %v1205_v60  ;;  %v1167_v5 = vpop.f32.mrb[32].mxu0  ;;  %v1224_v51 = vunpack.c.l.bf16 %v1993_v31  ;;  %v1219_v45 = vunpack.c.h.bf16 %v1988_v29 }
 0x2e2   : > { %v1268_v10 = vpack.c.bf16 %v1256_v62, %v1250_v61  ;;  %v1259_v28 = vadd.f32 %v1235_v59, %v1207_v63  ;;  %v1168_v13 = vadd.f32 %v1167_v5, %v2173_v11  ;;  %v1169_v15 = vpop.f32.mrb[33].mxu0  ;;  %v1225_v25 = vunpack.c.h.bf16 %v1993_v31 }
 0x2e3   : > { %v1270_v19 = vpack.c.bf16 %v1258_v2, %v1252_v0  ;;  %v1170_v22 = vadd.f32 %v1169_v15, %v2173_v11  ;;  %v1171_v18 = vpop.f32.mrb[34].mxu0  ;;  %v1269_v6 = vpack.c.bf16 %v1257_v4, %v1251_v1  ;;  %v1814_v11 = vld [vmem:[%s2312_s7] sm:$0xff]   ;;  %v1230_v36 = vunpack.c.l.bf16 %v2014_v39 }
 0x2e4   : > { %v1190_v56 = vmax.f32 %v1168_v13, 0.0  ;;  %v1172_v27 = vadd.f32 %v1171_v18, %v2176_v34  ;;  %v1173_v17 = vpop.f32.mrb[35].mxu0  ;;  %v1271_v30 = vpack.c.bf16 %v1259_v28, %v1253_v9  ;;  %v1236_v57 = vunpack.c.l.bf16 %v2017_v40 }
 0x2e5   : > { %v1191_v3 = vmax.f32 %v1170_v22, 0.0  ;;  %v1174_v24 = vadd.f32 %v1173_v17, %v2176_v34  ;;  %1316 = vmatprep.subr.bf16.mxu1 %v1269_v6  ;;  %v1231_v47 = vunpack.c.h.bf16 %v2014_v39  ;;  %v1237_v49 = vunpack.c.h.bf16 %v2017_v40  ;;  %v2251_v40 = vpop.permute.xlu0 %1280 }
 0x2e6   : > { %v1196_v26 = vmax.f32 %v1172_v27, 0.0  ;;  %1369 = vmatprep.subr.bf16.mxu0 %v1271_v30  ;;  %1317 = vmatpush1.bf16.msra.mxu1 %v1268_v10  ;;  %v1242_v58 = vadd.f32 %v1218_v21, %v1190_v56 }
 0x2e7   : > { %v1197_v32 = vmax.f32 %v1174_v24, 0.0  ;;  %1370 = vmatpush1.bf16.msra.mxu0 %v1270_v19  ;;  %v1243_v35 = vadd.f32 %v1219_v45, %v1191_v3 }
 0x2e8   : > { %v1248_v7 = vadd.f32 %v1224_v51, %v1196_v26 }
 0x2e9   : > { %v1249_v42 = vadd.f32 %v1225_v25, %v1197_v32  ;;  %v1177_v33 = vpop.f32.mrb[36].mxu0  ;;  %1755 = vmatmul.mubr.msk.bf16.vlgmr.msra.gmra.mrb[32].mxu1 %vm542_vm0, %v1814_v11  ;;  %v2263_v51 = vpop.permute.xlu0 %1290 }
 0x2ea   : > { %v1266_v29 = vpack.c.bf16 %v1248_v7, %v1242_v58  ;;  %v1178_v31 = vadd.f32 %v1177_v33, %v2199_v8  ;;  %1757 = vmatmul.mubr.msk.bf16.vlgmr.msra.gmra.mrb[40].mxu0 %vm542_vm0, %v1814_v11  ;;  %v1179_v34 = vpop.f32.mrb[37].mxu0  ;;  %1356 = vmatprep.mubr.bf16.mxu1 %v1840_v12 }
 0x2eb   : > { %v1180_v41 = vadd.f32 %v1179_v34, %v2199_v8  ;;  %v1181_v23 = vpop.f32.mrb[38].mxu0  ;;  %v1267_v43 = vpack.c.bf16 %v1249_v42, %v1243_v35  ;;  %1409 = vmatprep.mubr.bf16.mxu0 %v1840_v12  ;;  %v1815_v8 = vld [vmem:[%s2312_s7 + $0x8] sm:$0xff]  }
 0x2ec   : > { %v1202_v44 = vmax.f32 %v1178_v31, 0.0  ;;  %v1182_v37 = vadd.f32 %v1181_v23, %v2202_v14  ;;  %v1183_v38 = vpop.f32.mrb[39].mxu0 }
 0x2ed   : > { %v1203_v46 = vmax.f32 %v1180_v41, 0.0  ;;  %v1184_v48 = vadd.f32 %v1183_v38, %v2202_v14  ;;  %1420 = vmatprep.subr.bf16.mxu1 %v1267_v43  ;;  %v2253_v14 = vpop.permute.xlu1 %1285 }
 0x2ee   : > { %v1208_v50 = vmax.f32 %v1182_v37, 0.0  ;;  %1421 = vmatpush1.bf16.msra.mxu1 %v1266_v29  ;;  %v1254_v52 = vadd.f32 %v1230_v36, %v1202_v44 }
 0x2ef   : > { %v1209_v16 = vmax.f32 %v1184_v48, 0.0  ;;  %v1255_v54 = vadd.f32 %v1231_v47, %v1203_v46 }
 0x2f0   : > { %v1260_v53 = vadd.f32 %v1236_v57, %v1208_v50 }
 0x2f1   : > { %v1261_v55 = vadd.f32 %v1237_v49, %v1209_v16  ;;  %1756 = vmatmul.mubr.msk.bf16.gmra.mrb[36].mxu1 %vm542_vm0, %v1815_v8  ;;  %v2265_v45 = vpop.permute.xlu1 %1295 }
 0x2f2   : > { %v1272_v59 = vpack.c.bf16 %v1260_v53, %v1254_v52  ;;  %1758 = vmatmul.mubr.msk.bf16.gmra.mrb[44].mxu0 %vm542_vm0, %v1815_v8  ;;  %1452 = vmatprep.mubr.bf16.mxu1 %v1840_v12 }
 0x2f3   : > { %v1273_v39 = vpack.c.bf16 %v1261_v55, %v1255_v54  ;;  %1551 = vmatprep.mubr.bf16.mxu0 %v1840_v12 }
 0x2f5   : > { %1422 = vmatprep.subr.bf16.mxu1 %v1273_v39 }
 0x2f6   : > { %1423 = vmatpush1.bf16.msra.mxu1 %v1272_v59 }
 0x2f9   : > { %1759 = vmatmul.mubr.msk.bf16.vlgmr.msra.gmra.mrb[40].mxu1 %vm542_vm0, %v1814_v11 }
 0x2fa   : > { %1462 = vmatprep.mubr.bf16.mxu1 %v1840_v12 }
 0x301   : > { %1760 = vmatmul.mubr.msk.bf16.gmra.mrb[44].mxu1 %vm542_vm0, %v1815_v8 }
 0x302   : > { %1592 = vmatprep.mubr.bf16.mxu1 %v1840_v12 }
 0x3bc   : > { %v1348_v20 = vpop.f32.mrb[32].mxu1 }
 0x3bd   : > { %v1349_v60 = vadd.f32 %v1348_v20, %v2251_v40  ;;  %v1401_v61 = vpop.f32.mrb[40].mxu0  ;;  %v1350_v62 = vpop.f32.mrb[33].mxu1 }
 0x3be   : > { %v1402_v63 = vadd.f32 %v1401_v61, %v2251_v40  ;;  %v1351_v0 = vadd.f32 %v1350_v62, %v2251_v40  ;;  %v1403_v1 = vpop.f32.mrb[41].mxu0  ;;  %v1352_v2 = vpop.f32.mrb[34].mxu1 }
 0x3bf   : > { %v1404_v4 = vadd.f32 %v1403_v1, %v2251_v40  ;;  %v1353_v5 = vadd.f32 %v1352_v2, %v2253_v14  ;;  %v1405_v9 = vpop.f32.mrb[42].mxu0  ;;  %v1354_v10 = vpop.f32.mrb[35].mxu1  ;;  %v1473_v19 = vmax.f32 %v1349_v60, 0.0 }
 0x3c0   : > { %v1406_v28 = vadd.f32 %v1405_v9, %v2253_v14  ;;  %v1355_v13 = vadd.f32 %v1354_v10, %v2253_v14  ;;  %v1407_v15 = vpop.f32.mrb[43].mxu0  ;;  %v1475_v18 = vmax.f32 %v1402_v63, 0.0  ;;  %v1474_v6 = vmax.f32 %v1351_v0, 0.0  ;;  %v1497_v63 = vld [vmem:[%s2314_s9] sm:$0xf] }
 0x3c1   : > { %v1479_v21 = vmax.f32 %v1353_v5, 0.0  ;;  %v1408_v22 = vadd.f32 %v1407_v15, %v2253_v14  ;;  %v1476_v17 = vmax.f32 %v1404_v4, 0.0 }
 0x3c2   : > { %v1481_v56 = vmax.f32 %v1406_v28, 0.0  ;;  %v1480_v27 = vmax.f32 %v1355_v13, 0.0 }
 0x3c3   : > { %v1498_v30 = vpack.c.bf16 %v1479_v21, %v1473_v19  ;;  %v1482_v3 = vmax.f32 %v1408_v22, 0.0 }
 0x3c4   : > { %v1500_v24 = vpack.c.bf16 %v1481_v56, %v1475_v18  ;;  %v1499_v25 = vpack.c.bf16 %v1480_v27, %v1474_v6  ;;  %v1358_v11 = vpop.f32.mrb[36].mxu1 }
 0x3c5   : > { %v1501_v26 = vpack.c.bf16 %v1482_v3, %v1476_v17  ;;  %v1359_v32 = vadd.f32 %v1358_v11, %v2263_v51  ;;  %v1411_v58 = vpop.f32.mrb[44].mxu0  ;;  %v1360_v7 = vpop.f32.mrb[37].mxu1 }
 0x3c6   : > { %v1412_v35 = vadd.f32 %v1411_v58, %v2263_v51  ;;  %v1361_v42 = vadd.f32 %v1360_v7, %v2263_v51  ;;  %v1413_v33 = vpop.f32.mrb[45].mxu0  ;;  %v1362_v29 = vpop.f32.mrb[38].mxu1  ;;  %1519 = vmatprep.subr.bf16.mxu0 %v1499_v25 }
 0x3c7   : > { %v1414_v31 = vadd.f32 %v1413_v33, %v2263_v51  ;;  %v1363_v34 = vadd.f32 %v1362_v29, %v2265_v45  ;;  %v1415_v41 = vpop.f32.mrb[46].mxu0  ;;  %1560 = vmatprep.subr.bf16.mxu1 %v1501_v26  ;;  %v1364_v23 = vpop.f32.mrb[39].mxu1  ;;  %1520 = vmatpush1.bf16.msra.mxu0 %v1498_v30  ;;  %v1485_v37 = vmax.f32 %v1359_v32, 0.0 }
 0x3c8   : > { %v1416_v43 = vadd.f32 %v1415_v41, %v2265_v45  ;;  %v1365_v44 = vadd.f32 %v1364_v23, %v2265_v45  ;;  %v1417_v36 = vpop.f32.mrb[47].mxu0  ;;  %1561 = vmatpush1.bf16.msra.mxu1 %v1500_v24  ;;  %v1487_v46 = vmax.f32 %v1412_v35, 0.0  ;;  %v1486_v47 = vmax.f32 %v1361_v42, 0.0 }
 0x3c9   : > { %v1491_v57 = vmax.f32 %v1363_v34, 0.0  ;;  %v1418_v38 = vadd.f32 %v1417_v36, %v2265_v45  ;;  %v1488_v8 = vmax.f32 %v1414_v31, 0.0 }
 0x3ca   : > { %v1493_v48 = vmax.f32 %v1416_v43, 0.0  ;;  %v1492_v49 = vmax.f32 %v1365_v44, 0.0 }
 0x3cb   : > { %v1504_v50 = vpack.c.bf16 %v1491_v57, %v1485_v37  ;;  %v1494_v16 = vmax.f32 %v1418_v38, 0.0 }
 0x3cc   : > { %v1506_v52 = vpack.c.bf16 %v1493_v48, %v1487_v46  ;;  %v1505_v53 = vpack.c.bf16 %v1492_v49, %v1486_v47  ;;  %v1454_v54 = vpop.f32.mrb[40].mxu1 }
 0x3cd   : > { %v1507_v55 = vpack.c.bf16 %v1494_v16, %v1488_v8  ;;  %v1455_v59 = vadd.f32 %v1454_v54, %v2251_v40  ;;  %v1456_v39 = vpop.f32.mrb[41].mxu1 }
 0x3ce   : > { %v1457_v20 = vadd.f32 %v1456_v39, %v2251_v40  ;;  %v1458_v60 = vpop.f32.mrb[42].mxu1  ;;  %1521 = vmatprep.subr.bf16.mxu0 %v1505_v53 }
 0x3cf   : > { %v1459_v61 = vadd.f32 %v1458_v60, %v2253_v14  ;;  %1562 = vmatprep.subr.bf16.mxu1 %v1507_v55  ;;  %v1460_v62 = vpop.f32.mrb[43].mxu1  ;;  %1522 = vmatpush1.bf16.msra.mxu0 %v1504_v50  ;;  %v1477_v1 = vmax.f32 %v1455_v59, 0.0 }
 0x3d0   : > { %v1461_v0 = vadd.f32 %v1460_v62, %v2253_v14  ;;  %1563 = vmatpush1.bf16.msra.mxu1 %v1506_v52  ;;  %v1478_v4 = vmax.f32 %v1457_v20, 0.0 }
 0x3d1   : > { %v1483_v2 = vmax.f32 %v1459_v61, 0.0 }
 0x3d2   : > { %v1484_v5 = vmax.f32 %v1461_v0, 0.0  ;;  %1761 = vmatmul.mubr.msk.bf16.vlgmr.msra.gmra.mrb[48].mxu0 %vm542_vm0, %v1497_v63 }
 0x3d3   : > { %v1502_v40 = vpack.c.bf16 %v1483_v2, %v1477_v1  ;;  %1762 = vmatmul.mubr.msk.bf16.vlgmr.msra.gmra.mrb[48].mxu1 %vm542_vm0, %v1497_v63  ;;  %1633 = vmatprep.mubr.bf16.mxu0 %v1840_v12 }
 0x3d4   : > { %v1503_v9 = vpack.c.bf16 %v1484_v5, %v1478_v4  ;;  %v1464_v10 = vpop.f32.mrb[44].mxu1 }
 0x3d5   : > { %v1465_v28 = vadd.f32 %v1464_v10, %v2263_v51  ;;  %v1466_v13 = vpop.f32.mrb[45].mxu1 }
 0x3d6   : > { %v1467_v15 = vadd.f32 %v1466_v13, %v2263_v51  ;;  %v1468_v14 = vpop.f32.mrb[46].mxu1  ;;  %1601 = vmatprep.subr.bf16.mxu0 %v1503_v9  ;;  %v1514_v51 = vpop.permute.xlu0 %1513 }
 0x3d7   : > { %v1469_v19 = vadd.f32 %v1468_v14, %v2265_v45  ;;  %v1470_v21 = vpop.f32.mrb[47].mxu1  ;;  %1602 = vmatpush1.bf16.msra.mxu0 %v1502_v40  ;;  %v1489_v18 = vmax.f32 %v1465_v28, 0.0 }
 0x3d8   : > { %v1471_v22 = vadd.f32 %v1470_v21, %v2265_v45  ;;  %v1490_v56 = vmax.f32 %v1467_v15, 0.0 }
 0x3d9   : > { %v1495_v6 = vmax.f32 %v1469_v19, 0.0 }
 0x3da   : > { %v1496_v12 = vmax.f32 %v1471_v22, 0.0 }
 0x3db   : > { %v1508_v27 = vpack.c.bf16 %v1495_v6, %v1489_v18 }
 0x3dc   : > { %v1509_v17 = vpack.c.bf16 %v1496_v12, %v1490_v56 }
 0x3de   : > { %1603 = vmatprep.subr.bf16.mxu0 %v1509_v17 }
 0x3df   : > { %1604 = vmatpush1.bf16.msra.mxu0 %v1508_v27 }
 0x3e2   : > { %1763 = vmatmul.mubr.msk.bf16.vlgmr.msra.gmra.mrb[52].mxu0 %vm542_vm0, %v1497_v63 }
 0x4a5   : > { %v1553_v30 = vpop.f32.mrb[48].mxu0 }
 0x4a6   : > { %v1554_v3 = vadd.f32 %v1553_v30, %v1514_v51  ;;  %v1594_v45 = vpop.f32.mrb[48].mxu1  ;;  %v1555_v24 = vpop.f32.mrb[49].mxu0 }
 0x4a7   : > { %v1595_v25 = vadd.f32 %v1594_v45, %v1514_v51  ;;  %v1556_v11 = vadd.f32 %v1555_v24, %v1514_v51  ;;  %v1596_v26 = vpop.f32.mrb[49].mxu1  ;;  %v1557_v32 = vpop.f32.mrb[50].mxu0 }
 0x4a8   : > { %1642 = vst [vmem:[%s429_s16] sm:$0xff] %v1554_v3  ;;  %v1597_v58 = vadd.f32 %v1596_v26, %v1514_v51  ;;  %v1558_v7 = vpop.f32.mrb[51].mxu0  ;;  %v1598_v35 = vpop.f32.mrb[50].mxu1 }
 0x4a9   : > { %1644 = vst [vmem:[%s429_s16 + $0x10] sm:$0xff] %v1595_v25  ;;  %1643 = vst [vmem:[%s429_s16 + $0x8] sm:$0xff] %v1556_v11  ;;  %v1599_v42 = vpop.f32.mrb[51].mxu1 }
 0x4aa   : > { %1645 = vst [vmem:[%s429_s16 + $0x18] sm:$0xff] %v1597_v58 }
 0x4b5   : > { %v1635_v33 = vpop.f32.mrb[52].mxu0 }
 0x4b6   : > { %v1636_v29 = vadd.f32 %v1635_v33, %v1514_v51  ;;  %v1637_v31 = vpop.f32.mrb[53].mxu0 }
 0x4b7   : > { %v1638_v34 = vadd.f32 %v1637_v31, %v1514_v51  ;;  %v1639_v41 = vpop.f32.mrb[54].mxu0 }
 0x4b8   : > { %1646 = vst [vmem:[%s429_s16 + $0x20] sm:$0xff] %v1636_v29  ;;  %v1640_v23 = vpop.f32.mrb[55].mxu0 }
 0x4b9   : > { %1647 = vst [vmem:[%s429_s16 + $0x28] sm:$0xff] %v1638_v34 }
 0x4ba PF: > { %p18_p9 = scmp.ge.s32.totalorder %s1918_s21, 6   ;;  %s2317_s17 = smov %s1834_s18 }
 0x4bb   : > { %s2318_s18 = smov %s1927_s24  ;;  %s2319_s19 = smov %s1918_s21 }
 0x4bc   :  { %20 = sbr.rel (!%p18_p9) target bundleno = 2 (0x2), region = 122 }

</bundles_post_ra>
